<compile_context>
chip_gen: v7x
topology: tpu7x:2x2x1
jax: 0.10.0
libtpu: 0.0.40
codegen_flags: <defaults>
</compile_context>

<pallas_src>
import functools
import math

import jax
import jax.numpy as jnp
from jax import lax
from jax.experimental import pallas as pl
from jax.experimental.pallas import tpu as pltpu

LN_EPS = 1e-5  # PyTorch nn.LayerNorm default


def _gelu(x, approx):
    if approx:
        # tanh approximation -> EUP slot (effectively free vs. VALU polynomial)
        return jax.nn.gelu(x, approximate=True)
    # exact erf formulation == PyTorch nn.GELU() default
    return 0.5 * x * (1.0 + lax.erf(x * (1.0 / math.sqrt(2.0))))


def mixer2d_kernel(x_ref,
                   ln1_w_ref, ln1_b_ref, ln2_w_ref, ln2_b_ref,
                   tm_w1_ref, tm_b1_ref, tm_w2_ref, tm_b2_ref,
                   cm_w1t_ref, cm_b1_ref, cm_w2t_ref, cm_b2_ref,
                   o_ref, *, inv_n, c_valid, approx_gelu):
    x = x_ref[...]                                   # (bb, Tp, Cp) f32
    bb, tp, cp = x.shape

    # ---- LN_1: per-sample LayerNorm over the [T, C] plane.  Padded rows/lanes
    #      are exactly zero, so single-pass sums are correct with inv_n = 1/(T*C)
    #      (the REAL element count). ----
    s1 = jnp.sum(x, axis=(1, 2), keepdims=True)
    s2 = jnp.sum(x * x, axis=(1, 2), keepdims=True)
    mu = s1 * inv_n
    var = jnp.maximum(s2 * inv_n - mu * mu, 0.0)     # clamp single-pass variance
    h = (x - mu) * lax.rsqrt(var + LN_EPS) * ln1_w_ref[...] + ln1_b_ref[...]

    # ---- time mixer: Linear(T,T) -> GELU -> Linear(T,T) along the T axis,
    #      batched over the whole block as ONE (Tp,Tp) @ (Tp, bb*Cp) matmul.
    #      H[t, b*Cp + c] == h[b, t, c] (lane-concat of per-sample planes). ----
    h16 = h.astype(jnp.bfloat16)                     # single bf16 cast
    if bb == 1:
        h2d = h16[0]                                                  # (Tp, Cp)
    else:
        h2d = jnp.concatenate([h16[b] for b in range(bb)], axis=1)    # (Tp, bb*Cp)
    tt = jnp.dot(tm_w1_ref[...], h2d,
                 preferred_element_type=jnp.float32) + tm_b1_ref[...]
    tt = _gelu(tt, approx_gelu)
    tt = jnp.dot(tm_w2_ref[...], tt.astype(jnp.bfloat16),
                 preferred_element_type=jnp.float32) + tm_b2_ref[...]
    # split the 128-aligned lane chunks back into (bb, Tp, Cp)
    if bb == 1:
        tm = tt[None]
    else:
        tm = jnp.stack([tt[:, b * cp:(b + 1) * cp] for b in range(bb)], axis=0)
    z = tm + x                                       # residual with ORIGINAL input

    # Padded channel lanes picked up the broadcast time-mixer biases; zero them
    # once so LN_2 statistics (and the output) stay exact.
    if c_valid != cp:
        lane = lax.broadcasted_iota(jnp.int32, (1, 1, cp), 2)
        z = jnp.where(lane < c_valid, z, 0.0)

    # ---- LN_2 over [T, C] of (timeMixer(x) + x), single-pass stats. ----
    s1 = jnp.sum(z, axis=(1, 2), keepdims=True)
    s2 = jnp.sum(z * z, axis=(1, 2), keepdims=True)
    mu = s1 * inv_n
    var = jnp.maximum(s2 * inv_n - mu * mu, 0.0)
    xx = (z - mu) * lax.rsqrt(var + LN_EPS) * ln2_w_ref[...] + ln2_b_ref[...]

    # ---- channel mixer: Linear(C,C) -> GELU -> Linear(C,C) on the last dim as
    #      one (bb*Tp, Cp) @ (Cp, Cp) matmul.  Tp % 8 == 0 so the reshapes are
    #      layout no-ops; weights are pre-transposed in the wrapper. ----
    xx2 = xx.reshape(bb * tp, cp).astype(jnp.bfloat16)
    cc = jnp.dot(xx2, cm_w1t_ref[...],
                 preferred_element_type=jnp.float32) + cm_b1_ref[...]
    cc = _gelu(cc, approx_gelu)
    cc = jnp.dot(cc.astype(jnp.bfloat16), cm_w2t_ref[...],
                 preferred_element_type=jnp.float32) + cm_b2_ref[...]

    o_ref[...] = xx + cc.reshape(bb, tp, cp)         # x + y


def _round_up(n, m):
    return ((n + m - 1) // m) * m


def _device_vmem_bytes():
    try:
        return int(pltpu.get_tpu_info().vmem_capacity_bytes)
    except Exception:
        return 64 * 1024 * 1024        # conservative (v7x per-core VMEM)


def _choose_block_b(batch, t_pad, c_pad, act_budget):
    # ~14 live f32-plane equivalents per sample (activations, bf16 copies,
    # 2x-buffered in/out blocks) -> ~64 bytes per padded element.
    per_sample = 64 * t_pad * c_pad
    best, best_key = 1, None
    for bb in range(1, batch + 1):
        if batch % bb:
            continue
        steps = batch // bb
        fits = per_sample * bb <= act_budget
        steps_ok = 2 if steps >= 4 else (1 if steps >= 2 else 0)   # >=2 per TC on v7x
        align = 2 if (bb * t_pad) % 256 == 0 else (1 if (bb * t_pad) % 128 == 0 else 0)
        key = (fits, steps_ok, align, bb)
        if best_key is None or key > best_key:
            best, best_key = bb, key
    return best


def mixer2d_forward(x, params, *, block_b=None, approx_gelu=False):
    B, T, C = x.shape
    Tp = _round_up(T, 8)       # sublane-aligned -> channel-mixer reshapes are no-ops
    Cp = _round_up(C, 128)     # lane-dense I/O -> unmasked full-lane stores

    f32 = lambda a: jnp.asarray(a, jnp.float32)

    def pad2(a, rows, cols):
        a = f32(a)
        return jnp.pad(a, ((0, rows - a.shape[0]), (0, cols - a.shape[1])))

    def pad1(a, n):
        a = f32(a)
        return jnp.pad(a, ((0, n - a.shape[0]),))

    # One-time wrapper-side parameter prep (hoisted out of the kernel):
    #   * zero-pad everything to the padded (Tp, Cp) geometry (numerically inert)
    #   * time-mixer weights stay PyTorch (out,in)    -> used as  W @ H
    #   * channel-mixer weights pre-transposed (in,out)-> used as  X @ Wt
    #   * matmul weights pre-cast to bf16 (f32 MXU accumulation)
    #   * time-mixer biases -> (Tp, 1): broadcast over the bb*Cp lane axis
    ln1_w = pad2(params["ln1_w"], Tp, Cp); ln1_b = pad2(params["ln1_b"], Tp, Cp)
    ln2_w = pad2(params["ln2_w"], Tp, Cp); ln2_b = pad2(params["ln2_b"], Tp, Cp)
    tm_w1 = pad2(params["tm_w1"], Tp, Tp).astype(jnp.bfloat16)
    tm_w2 = pad2(params["tm_w2"], Tp, Tp).astype(jnp.bfloat16)
    tm_b1 = pad1(params["tm_b1"], Tp).reshape(Tp, 1)
    tm_b2 = pad1(params["tm_b2"], Tp).reshape(Tp, 1)
    cm_w1t = pad2(jnp.asarray(params["cm_w1"]).T, Cp, Cp).astype(jnp.bfloat16)
    cm_w2t = pad2(jnp.asarray(params["cm_w2"]).T, Cp, Cp).astype(jnp.bfloat16)
    cm_b1 = pad1(params["cm_b1"], Cp).reshape(1, Cp)
    cm_b2 = pad1(params["cm_b2"], Cp).reshape(1, Cp)

    x_p = f32(x)
    if (Tp, Cp) != (T, C):
        x_p = jnp.pad(x_p, ((0, 0), (0, Tp - T), (0, Cp - C)))

    vmem_cap = _device_vmem_bytes()
    if block_b is None:
        block_b = _choose_block_b(B, Tp, Cp, act_budget=min(vmem_cap // 4, 24 << 20))
    assert B % block_b == 0, "batch must be divisible by block_b"
    grid = (B // block_b,)

    # Constant operands: whole array resident in VMEM.  Their block never
    # changes, so they get a single buffer loaded once (no per-step DMA /
    # double-buffering by the pipeliner).
    vmem_full = pl.BlockSpec(memory_space=pltpu.MemorySpace.VMEM)
    in_specs = ([pl.BlockSpec((block_b, Tp, Cp), lambda g: (g, 0, 0))]
                + [vmem_full] * 12)

    flops = 4 * B * Tp * Cp * (Tp + Cp)       # 2 mixers x 2 matmuls, 2*M*N*K each
    transcendentals = 2 * B * Tp * Cp         # two GELU planes per sample
    param_bytes = (4 * 4 * Tp * Cp            # LN affine planes (f32)
                   + 2 * (2 * Tp * Tp + 2 * Cp * Cp)   # matmul weights (bf16)
                   + 4 * (2 * Tp + 2 * Cp))   # bias vectors (f32)
    bytes_accessed = 4 * 2 * B * Tp * Cp + param_bytes

    kernel = functools.partial(
        mixer2d_kernel,
        inv_n=1.0 / float(T * C),             # REAL element count (padding is zero)
        c_valid=C,
        approx_gelu=approx_gelu,
    )

    out_p = pl.pallas_call(
        kernel,
        out_shape=jax.ShapeDtypeStruct((B, Tp, Cp), jnp.float32),
        grid_spec=pltpu.PrefetchScalarGridSpec(
            num_scalar_prefetch=0,
            grid=grid,
            in_specs=in_specs,
            out_specs=pl.BlockSpec((block_b, Tp, Cp), lambda g: (g, 0, 0)),
        ),
        compiler_params=pltpu.CompilerParams(
            dimension_semantics=("parallel",),
            # explicit, generation-aware scoped-VMEM limit (v7x: 32 MiB of its
            # 64 MiB; v5e/v6e: 64 MiB of 128 MiB), with headroom for the
            # compiler's own scratch.
            vmem_limit_bytes=int(min(max(vmem_cap // 2, 32 << 20), 100 << 20)),
        ),
        cost_estimate=pl.CostEstimate(
            flops=flops,
            transcendentals=transcendentals,
            bytes_accessed=bytes_accessed,
        ),
    )(x_p,
      ln1_w, ln1_b, ln2_w, ln2_b,
      tm_w1, tm_b1, tm_w2, tm_b2,
      cm_w1t, cm_b1, cm_w2t, cm_b2)

    if (Tp, Cp) != (T, C):
        out_p = out_p[:, :T, :C]
    return out_p


def make_params(key, T, C):
    ks = jax.random.split(key, 12)
    u = lambda k, shape, fan_in: jax.random.uniform(
        k, shape, jnp.float32, -1.0 / math.sqrt(fan_in), 1.0 / math.sqrt(fan_in))
    return {
        # LayerNorm params initialized non-trivially to exercise the affine path
        "ln1_w": 1.0 + 0.1 * jax.random.normal(ks[0], (T, C), jnp.float32),
        "ln1_b": 0.1 * jax.random.normal(ks[1], (T, C), jnp.float32),
        "ln2_w": 1.0 + 0.1 * jax.random.normal(ks[2], (T, C), jnp.float32),
        "ln2_b": 0.1 * jax.random.normal(ks[3], (T, C), jnp.float32),
        # Linear weights stored PyTorch-style as (out_features, in_features)
        "tm_w1": u(ks[4], (T, T), T), "tm_b1": u(ks[5], (T,), T),
        "tm_w2": u(ks[6], (T, T), T), "tm_b2": u(ks[7], (T,), T),
        "cm_w1": u(ks[8], (C, C), C), "cm_b1": u(ks[9], (C,), C),
        "cm_w2": u(ks[10], (C, C), C), "cm_b2": u(ks[11], (C,), C),
    }


def mixer2d_reference(x, p):
    # Pure-JAX, full-f32 mirror of the PyTorch forward (exact semantics).
    hi = jax.lax.Precision.HIGHEST

    def ln(v, w, b):
        mu = jnp.mean(v, axis=(1, 2), keepdims=True)
        var = jnp.mean((v - mu) ** 2, axis=(1, 2), keepdims=True)
        return (v - mu) / jnp.sqrt(var + LN_EPS) * w + b

    def linear(v, w, b):
        return jnp.dot(v, w.T, precision=hi) + b

    h = ln(x, p["ln1_w"], p["ln1_b"])
    h = jnp.transpose(h, (0, 2, 1))                       # (B, C, T)
    h = linear(h, p["tm_w1"], p["tm_b1"])
    h = _gelu(h, False)
    h = linear(h, p["tm_w2"], p["tm_b2"])
    h = jnp.transpose(h, (0, 2, 1))                       # (B, T, C)
    xx = ln(h + x, p["ln2_w"], p["ln2_b"])
    y = linear(xx, p["cm_w1"], p["cm_b1"])
    y = _gelu(y, False)
    y = linear(y, p["cm_w2"], p["cm_b2"])
    return xx + y


if __name__ == "__main__":
    # TODO(synk): dropout (MixerBlock dropout=0.0 in Mixer2d) is a no-op in this
    # forward and is not implemented.
    B, T, C = 4, 16, 8   # batch, time_steps, channels (small demo shapes;
                         # the wrapper pads T->16, C->128 for lane-dense stores)
    key = jax.random.PRNGKey(0)
    kx, kp = jax.random.split(key)
    x = jax.random.normal(kx, (B, T, C), jnp.float32)
    params = make_params(kp, T, C)

    out = jax.block_until_ready(mixer2d_forward(x, params))
    assert out.shape == (B, T, C)

    # Tolerance accounts for bf16 MXU operands (f32 accumulation) vs. the
    # exact-f32 reference; observed drift is ~1e-3 at these unit-scale sizes.
    ref = mixer2d_reference(x, params)
    assert jnp.allclose(out, ref, atol=1e-2, rtol=1e-2), (
        float(jnp.max(jnp.abs(out - ref))))

    print("KERNEL_OK")
</pallas_src>

<mosaic_0001>
module attributes {stable_mosaic.version = 11 : i64} {
  func.func @mixer2d_kernel(%arg0: i32, %arg1: memref<1x16x128xf32, #tpu.memory_space<vmem>>, %arg2: memref<16x128xf32, #tpu.memory_space<vmem>>, %arg3: memref<16x128xf32, #tpu.memory_space<vmem>>, %arg4: memref<16x128xf32, #tpu.memory_space<vmem>>, %arg5: memref<16x128xf32, #tpu.memory_space<vmem>>, %arg6: memref<16x16xbf16, #tpu.memory_space<vmem>>, %arg7: memref<16x1xf32, #tpu.memory_space<vmem>>, %arg8: memref<16x16xbf16, #tpu.memory_space<vmem>>, %arg9: memref<16x1xf32, #tpu.memory_space<vmem>>, %arg10: memref<128x128xbf16, #tpu.memory_space<vmem>>, %arg11: memref<1x128xf32, #tpu.memory_space<vmem>>, %arg12: memref<128x128xbf16, #tpu.memory_space<vmem>>, %arg13: memref<1x128xf32, #tpu.memory_space<vmem>>, %arg14: memref<1x16x128xf32, #tpu.memory_space<vmem>>) attributes {dimension_semantics = [#tpu.dimension_semantics<parallel>], iteration_bounds = array<i64: 4>, scalar_prefetch = 0 : i64, scratch_operands = 0 : i64, tpu.core_type = #tpu.core_type<tc>, window_params = [{transform_indices = @transform_0, window_bounds = array<i64: 1, 16, 128>}, {pipeline_mode = #tpu.pipeline_mode<synchronous>, transform_indices = @transform_1, window_bounds = array<i64: 16, 128>}, {pipeline_mode = #tpu.pipeline_mode<synchronous>, transform_indices = @transform_2, window_bounds = array<i64: 16, 128>}, {pipeline_mode = #tpu.pipeline_mode<synchronous>, transform_indices = @transform_3, window_bounds = array<i64: 16, 128>}, {pipeline_mode = #tpu.pipeline_mode<synchronous>, transform_indices = @transform_4, window_bounds = array<i64: 16, 128>}, {pipeline_mode = #tpu.pipeline_mode<synchronous>, transform_indices = @transform_5, window_bounds = array<i64: 16, 16>}, {pipeline_mode = #tpu.pipeline_mode<synchronous>, transform_indices = @transform_6, window_bounds = array<i64: 16, 1>}, {pipeline_mode = #tpu.pipeline_mode<synchronous>, transform_indices = @transform_7, window_bounds = array<i64: 16, 16>}, {pipeline_mode = #tpu.pipeline_mode<synchronous>, transform_indices = @transform_8, window_bounds = array<i64: 16, 1>}, {pipeline_mode = #tpu.pipeline_mode<synchronous>, transform_indices = @transform_9, window_bounds = array<i64: 128, 128>}, {pipeline_mode = #tpu.pipeline_mode<synchronous>, transform_indices = @transform_10, window_bounds = array<i64: 1, 128>}, {pipeline_mode = #tpu.pipeline_mode<synchronous>, transform_indices = @transform_11, window_bounds = array<i64: 128, 128>}, {pipeline_mode = #tpu.pipeline_mode<synchronous>, transform_indices = @transform_12, window_bounds = array<i64: 1, 128>}, {transform_indices = @transform_13, window_bounds = array<i64: 1, 16, 128>}]} {
    %c0 = arith.constant 0 : index
    %c0_0 = arith.constant 0 : index
    %c0_1 = arith.constant 0 : index
    %0 = vector.load %arg1[%c0, %c0_0, %c0_1] : memref<1x16x128xf32, #tpu.memory_space<vmem>>, vector<1x16x128xf32>
    %cst = arith.constant dense<0.000000e+00> : vector<1xf32>
    %1 = vector.multi_reduction <add>, %0, %cst [1, 2] : vector<1x16x128xf32> to vector<1xf32>
    %2 = vector.shape_cast %1 : vector<1xf32> to vector<1x1x1xf32>
    %3 = arith.mulf %0, %0 : vector<1x16x128xf32>
    %cst_2 = arith.constant dense<0.000000e+00> : vector<1xf32>
    %4 = vector.multi_reduction <add>, %3, %cst_2 [1, 2] : vector<1x16x128xf32> to vector<1xf32>
    %5 = vector.shape_cast %4 : vector<1xf32> to vector<1x1x1xf32>
    %cst_3 = arith.constant 7.812500e-03 : f32
    %6 = vector.broadcast %cst_3 : f32 to vector<1x1x1xf32>
    %7 = arith.mulf %2, %6 : vector<1x1x1xf32>
    %cst_4 = arith.constant 7.812500e-03 : f32
    %8 = vector.broadcast %cst_4 : f32 to vector<1x1x1xf32>
    %9 = arith.mulf %5, %8 : vector<1x1x1xf32>
    %10 = arith.mulf %7, %7 : vector<1x1x1xf32>
    %11 = arith.subf %9, %10 : vector<1x1x1xf32>
    %cst_5 = arith.constant 0.000000e+00 : f32
    %12 = vector.broadcast %cst_5 : f32 to vector<1x1x1xf32>
    %13 = arith.maximumf %11, %12 : vector<1x1x1xf32>
    %14 = vector.broadcast %7 : vector<1x1x1xf32> to vector<1x16x128xf32>
    %15 = arith.subf %0, %14 : vector<1x16x128xf32>
    %cst_6 = arith.constant 9.99999974E-6 : f32
    %16 = vector.broadcast %cst_6 : f32 to vector<1x1x1xf32>
    %17 = arith.addf %13, %16 : vector<1x1x1xf32>
    %18 = math.rsqrt %17 : vector<1x1x1xf32>
    %19 = vector.broadcast %18 : vector<1x1x1xf32> to vector<1x16x128xf32>
    %20 = arith.mulf %15, %19 : vector<1x16x128xf32>
    %c0_7 = arith.constant 0 : index
    %c0_8 = arith.constant 0 : index
    %21 = vector.load %arg2[%c0_7, %c0_8] : memref<16x128xf32, #tpu.memory_space<vmem>>, vector<16x128xf32>
    %22 = vector.shape_cast %21 : vector<16x128xf32> to vector<1x16x128xf32>
    %23 = arith.mulf %20, %22 : vector<1x16x128xf32>
    %c0_9 = arith.constant 0 : index
    %c0_10 = arith.constant 0 : index
    %24 = vector.load %arg3[%c0_9, %c0_10] : memref<16x128xf32, #tpu.memory_space<vmem>>, vector<16x128xf32>
    %25 = vector.shape_cast %24 : vector<16x128xf32> to vector<1x16x128xf32>
    %26 = arith.addf %23, %25 : vector<1x16x128xf32>
    %27 = arith.truncf %26 : vector<1x16x128xf32> to vector<1x16x128xbf16>
    %28 = vector.shape_cast %27 : vector<1x16x128xbf16> to vector<16x128xbf16>
    %c0_11 = arith.constant 0 : index
    %c0_12 = arith.constant 0 : index
    %29 = vector.load %arg6[%c0_11, %c0_12] : memref<16x16xbf16, #tpu.memory_space<vmem>>, vector<16x16xbf16>
    %cst_13 = arith.constant dense<0.000000e+00> : vector<16x128xf32>
    %30 = tpu.matmul %29, %28, %cst_13 {dimension_numbers = #tpu.dot_dimension_numbers<[1], [0], [0], [1], [0, 0, 1, 1], [], []>} : vector<16x16xbf16>, vector<16x128xbf16>, vector<16x128xf32> -> vector<16x128xf32>
    %c0_14 = arith.constant 0 : index
    %c0_15 = arith.constant 0 : index
    %31 = vector.load %arg7[%c0_14, %c0_15] : memref<16x1xf32, #tpu.memory_space<vmem>>, vector<16x1xf32>
    %32 = vector.broadcast %31 : vector<16x1xf32> to vector<16x128xf32>
    %33 = arith.addf %30, %32 : vector<16x128xf32>
    %cst_16 = arith.constant 5.000000e-01 : f32
    %34 = vector.broadcast %cst_16 : f32 to vector<16x128xf32>
    %35 = arith.mulf %34, %33 : vector<16x128xf32>
    %cst_17 = arith.constant 0.707106769 : f32
    %36 = vector.broadcast %cst_17 : f32 to vector<16x128xf32>
    %37 = arith.mulf %33, %36 : vector<16x128xf32>
    %38 = math.erf %37 : vector<16x128xf32>
    %cst_18 = arith.constant 1.000000e+00 : f32
    %39 = vector.broadcast %cst_18 : f32 to vector<16x128xf32>
    %40 = arith.addf %39, %38 : vector<16x128xf32>
    %41 = arith.mulf %35, %40 : vector<16x128xf32>
    %c0_19 = arith.constant 0 : index
    %c0_20 = arith.constant 0 : index
    %42 = vector.load %arg8[%c0_19, %c0_20] : memref<16x16xbf16, #tpu.memory_space<vmem>>, vector<16x16xbf16>
    %43 = arith.truncf %41 : vector<16x128xf32> to vector<16x128xbf16>
    %cst_21 = arith.constant dense<0.000000e+00> : vector<16x128xf32>
    %44 = tpu.matmul %42, %43, %cst_21 {dimension_numbers = #tpu.dot_dimension_numbers<[1], [0], [0], [1], [0, 0, 1, 1], [], []>} : vector<16x16xbf16>, vector<16x128xbf16>, vector<16x128xf32> -> vector<16x128xf32>
    %c0_22 = arith.constant 0 : index
    %c0_23 = arith.constant 0 : index
    %45 = vector.load %arg9[%c0_22, %c0_23] : memref<16x1xf32, #tpu.memory_space<vmem>>, vector<16x1xf32>
    %46 = vector.broadcast %45 : vector<16x1xf32> to vector<16x128xf32>
    %47 = arith.addf %44, %46 : vector<16x128xf32>
    %48 = vector.shape_cast %47 : vector<16x128xf32> to vector<1x16x128xf32>
    %49 = arith.addf %48, %0 : vector<1x16x128xf32>
    %50 = tpu.iota {dimensions = array<i32: 2>} : vector<1x1x128xi32>
    %c8_i32 = arith.constant 8 : i32
    %51 = vector.broadcast %c8_i32 : i32 to vector<1x1x128xi32>
    %52 = arith.cmpi slt, %50, %51 : vector<1x1x128xi32>
    %cst_24 = arith.constant 0.000000e+00 : f32
    %53 = vector.shape_cast %52 : vector<1x1x128xi1> to vector<1x1x128xi1>
    %54 = vector.broadcast %53 : vector<1x1x128xi1> to vector<1x16x128xi1>
    %55 = vector.broadcast %cst_24 : f32 to vector<1x16x128xf32>
    %56 = arith.select %54, %49, %55 : vector<1x16x128xi1>, vector<1x16x128xf32>
    %cst_25 = arith.constant dense<0.000000e+00> : vector<1xf32>
    %57 = vector.multi_reduction <add>, %56, %cst_25 [1, 2] : vector<1x16x128xf32> to vector<1xf32>
    %58 = vector.shape_cast %57 : vector<1xf32> to vector<1x1x1xf32>
    %59 = arith.mulf %56, %56 : vector<1x16x128xf32>
    %cst_26 = arith.constant dense<0.000000e+00> : vector<1xf32>
    %60 = vector.multi_reduction <add>, %59, %cst_26 [1, 2] : vector<1x16x128xf32> to vector<1xf32>
    %61 = vector.shape_cast %60 : vector<1xf32> to vector<1x1x1xf32>
    %cst_27 = arith.constant 7.812500e-03 : f32
    %62 = vector.broadcast %cst_27 : f32 to vector<1x1x1xf32>
    %63 = arith.mulf %58, %62 : vector<1x1x1xf32>
    %cst_28 = arith.constant 7.812500e-03 : f32
    %64 = vector.broadcast %cst_28 : f32 to vector<1x1x1xf32>
    %65 = arith.mulf %61, %64 : vector<1x1x1xf32>
    %66 = arith.mulf %63, %63 : vector<1x1x1xf32>
    %67 = arith.subf %65, %66 : vector<1x1x1xf32>
    %cst_29 = arith.constant 0.000000e+00 : f32
    %68 = vector.broadcast %cst_29 : f32 to vector<1x1x1xf32>
    %69 = arith.maximumf %67, %68 : vector<1x1x1xf32>
    %70 = vector.broadcast %63 : vector<1x1x1xf32> to vector<1x16x128xf32>
    %71 = arith.subf %56, %70 : vector<1x16x128xf32>
    %cst_30 = arith.constant 9.99999974E-6 : f32
    %72 = vector.broadcast %cst_30 : f32 to vector<1x1x1xf32>
    %73 = arith.addf %69, %72 : vector<1x1x1xf32>
    %74 = math.rsqrt %73 : vector<1x1x1xf32>
    %75 = vector.broadcast %74 : vector<1x1x1xf32> to vector<1x16x128xf32>
    %76 = arith.mulf %71, %75 : vector<1x16x128xf32>
    %c0_31 = arith.constant 0 : index
    %c0_32 = arith.constant 0 : index
    %77 = vector.load %arg4[%c0_31, %c0_32] : memref<16x128xf32, #tpu.memory_space<vmem>>, vector<16x128xf32>
    %78 = vector.shape_cast %77 : vector<16x128xf32> to vector<1x16x128xf32>
    %79 = arith.mulf %76, %78 : vector<1x16x128xf32>
    %c0_33 = arith.constant 0 : index
    %c0_34 = arith.constant 0 : index
    %80 = vector.load %arg5[%c0_33, %c0_34] : memref<16x128xf32, #tpu.memory_space<vmem>>, vector<16x128xf32>
    %81 = vector.shape_cast %80 : vector<16x128xf32> to vector<1x16x128xf32>
    %82 = arith.addf %79, %81 : vector<1x16x128xf32>
    %83 = vector.shape_cast %82 : vector<1x16x128xf32> to vector<16x128xf32>
    %84 = arith.truncf %83 : vector<16x128xf32> to vector<16x128xbf16>
    %c0_35 = arith.constant 0 : index
    %c0_36 = arith.constant 0 : index
    %85 = vector.load %arg10[%c0_35, %c0_36] : memref<128x128xbf16, #tpu.memory_space<vmem>>, vector<128x128xbf16>
    %cst_37 = arith.constant dense<0.000000e+00> : vector<16x128xf32>
    %86 = tpu.matmul %84, %85, %cst_37 {dimension_numbers = #tpu.dot_dimension_numbers<[1], [0], [0], [1], [0, 0, 1, 1], [], []>} : vector<16x128xbf16>, vector<128x128xbf16>, vector<16x128xf32> -> vector<16x128xf32>
    %c0_38 = arith.constant 0 : index
    %c0_39 = arith.constant 0 : index
    %87 = vector.load %arg11[%c0_38, %c0_39] : memref<1x128xf32, #tpu.memory_space<vmem>>, vector<1x128xf32>
    %88 = vector.broadcast %87 : vector<1x128xf32> to vector<16x128xf32>
    %89 = arith.addf %86, %88 : vector<16x128xf32>
    %cst_40 = arith.constant 5.000000e-01 : f32
    %90 = vector.broadcast %cst_40 : f32 to vector<16x128xf32>
    %91 = arith.mulf %90, %89 : vector<16x128xf32>
    %cst_41 = arith.constant 0.707106769 : f32
    %92 = vector.broadcast %cst_41 : f32 to vector<16x128xf32>
    %93 = arith.mulf %89, %92 : vector<16x128xf32>
    %94 = math.erf %93 : vector<16x128xf32>
    %cst_42 = arith.constant 1.000000e+00 : f32
    %95 = vector.broadcast %cst_42 : f32 to vector<16x128xf32>
    %96 = arith.addf %95, %94 : vector<16x128xf32>
    %97 = arith.mulf %91, %96 : vector<16x128xf32>
    %98 = arith.truncf %97 : vector<16x128xf32> to vector<16x128xbf16>
    %c0_43 = arith.constant 0 : index
    %c0_44 = arith.constant 0 : index
    %99 = vector.load %arg12[%c0_43, %c0_44] : memref<128x128xbf16, #tpu.memory_space<vmem>>, vector<128x128xbf16>
    %cst_45 = arith.constant dense<0.000000e+00> : vector<16x128xf32>
    %100 = tpu.matmul %98, %99, %cst_45 {dimension_numbers = #tpu.dot_dimension_numbers<[1], [0], [0], [1], [0, 0, 1, 1], [], []>} : vector<16x128xbf16>, vector<128x128xbf16>, vector<16x128xf32> -> vector<16x128xf32>
    %c0_46 = arith.constant 0 : index
    %c0_47 = arith.constant 0 : index
    %101 = vector.load %arg13[%c0_46, %c0_47] : memref<1x128xf32, #tpu.memory_space<vmem>>, vector<1x128xf32>
    %102 = vector.broadcast %101 : vector<1x128xf32> to vector<16x128xf32>
    %103 = arith.addf %100, %102 : vector<16x128xf32>
    %104 = vector.shape_cast %103 : vector<16x128xf32> to vector<1x16x128xf32>
    %105 = arith.addf %82, %104 : vector<1x16x128xf32>
    %c0_48 = arith.constant 0 : index
    %c0_49 = arith.constant 0 : index
    %c0_50 = arith.constant 0 : index
    %106 = vector.load %arg14[%c0_48, %c0_49, %c0_50] : memref<1x16x128xf32, #tpu.memory_space<vmem>>, vector<1x16x128xf32>
    tpu.vector_store %arg14[%c0_48, %c0_49, %c0_50], %105 {strides = array<i32>} : memref<1x16x128xf32, #tpu.memory_space<vmem>>, vector<1x16x128xf32>,
    return
  }
  func.func @transform_0(%arg0: i32) -> (i32, i32, i32) {
    %c0_i32 = arith.constant 0 : i32
    %c0_i32_0 = arith.constant 0 : i32
    %c0_i32_1 = arith.constant 0 : i32
    return %arg0, %c0_i32, %c0_i32_0 : i32, i32, i32
  }
  func.func @transform_1(%arg0: i32) -> (i32, i32) {
    %c0_i32 = arith.constant 0 : i32
    %c0_i32_0 = arith.constant 0 : i32
    %c0_i32_1 = arith.constant 0 : i32
    return %c0_i32, %c0_i32_0 : i32, i32
  }
  func.func @transform_2(%arg0: i32) -> (i32, i32) {
    %c0_i32 = arith.constant 0 : i32
    %c0_i32_0 = arith.constant 0 : i32
    %c0_i32_1 = arith.constant 0 : i32
    return %c0_i32, %c0_i32_0 : i32, i32
  }
  func.func @transform_3(%arg0: i32) -> (i32, i32) {
    %c0_i32 = arith.constant 0 : i32
    %c0_i32_0 = arith.constant 0 : i32
    %c0_i32_1 = arith.constant 0 : i32
    return %c0_i32, %c0_i32_0 : i32, i32
  }
  func.func @transform_4(%arg0: i32) -> (i32, i32) {
    %c0_i32 = arith.constant 0 : i32
    %c0_i32_0 = arith.constant 0 : i32
    %c0_i32_1 = arith.constant 0 : i32
    return %c0_i32, %c0_i32_0 : i32, i32
  }
  func.func @transform_5(%arg0: i32) -> (i32, i32) {
    %c0_i32 = arith.constant 0 : i32
    %c0_i32_0 = arith.constant 0 : i32
    %c0_i32_1 = arith.constant 0 : i32
    return %c0_i32, %c0_i32_0 : i32, i32
  }
  func.func @transform_6(%arg0: i32) -> (i32, i32) {
    %c0_i32 = arith.constant 0 : i32
    %c0_i32_0 = arith.constant 0 : i32
    %c0_i32_1 = arith.constant 0 : i32
    return %c0_i32, %c0_i32_0 : i32, i32
  }
  func.func @transform_7(%arg0: i32) -> (i32, i32) {
    %c0_i32 = arith.constant 0 : i32
    %c0_i32_0 = arith.constant 0 : i32
    %c0_i32_1 = arith.constant 0 : i32
    return %c0_i32, %c0_i32_0 : i32, i32
  }
  func.func @transform_8(%arg0: i32) -> (i32, i32) {
    %c0_i32 = arith.constant 0 : i32
    %c0_i32_0 = arith.constant 0 : i32
    %c0_i32_1 = arith.constant 0 : i32
    return %c0_i32, %c0_i32_0 : i32, i32
  }
  func.func @transform_9(%arg0: i32) -> (i32, i32) {
    %c0_i32 = arith.constant 0 : i32
    %c0_i32_0 = arith.constant 0 : i32
    %c0_i32_1 = arith.constant 0 : i32
    return %c0_i32, %c0_i32_0 : i32, i32
  }
  func.func @transform_10(%arg0: i32) -> (i32, i32) {
    %c0_i32 = arith.constant 0 : i32
    %c0_i32_0 = arith.constant 0 : i32
    %c0_i32_1 = arith.constant 0 : i32
    return %c0_i32, %c0_i32_0 : i32, i32
  }
  func.func @transform_11(%arg0: i32) -> (i32, i32) {
    %c0_i32 = arith.constant 0 : i32
    %c0_i32_0 = arith.constant 0 : i32
    %c0_i32_1 = arith.constant 0 : i32
    return %c0_i32, %c0_i32_0 : i32, i32
  }
  func.func @transform_12(%arg0: i32) -> (i32, i32) {
    %c0_i32 = arith.constant 0 : i32
    %c0_i32_0 = arith.constant 0 : i32
    %c0_i32_1 = arith.constant 0 : i32
    return %c0_i32, %c0_i32_0 : i32, i32
  }
  func.func @transform_13(%arg0: i32) -> (i32, i32, i32) {
    %c0_i32 = arith.constant 0 : i32
    %c0_i32_0 = arith.constant 0 : i32
    %c0_i32_1 = arith.constant 0 : i32
    return %arg0, %c0_i32, %c0_i32_0 : i32, i32, i32
  }
}

</mosaic_0001>

<bundles_post_ra>
// kernel: tpu_custom_call.1
= control target key start
LH: loop header
LB: loop body
LE: loop exit
PB: predicated region body
PF: predicated region fallthrough
CT: control target
= control target key end

     0   :  { %s2329_s0 = inlined_call_operand.hbm [shape: f32[4,16,128], index: 0, kind: input, shape index: {}]   ;;  %s2330_s1 = inlined_call_operand.hbm [shape: f32[16,128], index: 1, kind: input, shape index: {}]   ;;  %s2331_s2 = inlined_call_operand.hbm [shape: f32[16,128], index: 2, kind: input, shape index: {}]   ;;  %s2332_s3 = inlined_call_operand.hbm [shape: f32[16,128], index: 3, kind: input, shape index: {}]   ;;  %s2333_s4 = inlined_call_operand.hbm [shape: f32[16,128], index: 4, kind: input, shape index: {}]   ;;  %s2334_s5 = inlined_call_operand.hbm [shape: bf16[16,16], index: 5, kind: input, shape index: {}]   ;;  %s2335_s6 = inlined_call_operand.vmem [shape: f32[16,1], index: 6, kind: input, shape index: {}]   ;;  %s2336_s7 = inlined_call_operand.hbm [shape: bf16[16,16], index: 7, kind: input, shape index: {}]   ;;  %s2337_s8 = inlined_call_operand.vmem [shape: f32[16,1], index: 8, kind: input, shape index: {}]   ;;  %s2338_s9 = inlined_call_operand.vmem [shape: bf16[128,128], index: 9, kind: input, shape index: {}]   ;;  %s2339_s10 = inlined_call_operand.vmem [shape: f32[1,128], index: 10, kind: input, shape index: {}]   ;;  %s2340_s11 = inlined_call_operand.hbm [shape: bf16[128,128], index: 11, kind: input, shape index: {}]   ;;  %s2341_s12 = inlined_call_operand.vmem [shape: f32[1,128], index: 12, kind: input, shape index: {}]   ;;  %s2342_s13 = inlined_call_operand.hbm [shape: f32[4,16,128], index: 13, kind: output, shape index: {}]  }
   0x1   :  { %2355 = sst [smem:[#allocation23_spill]] %s2330_s1 }
   0x2   :  { %2356 = sst [smem:[#allocation24_spill]] %s2332_s3 }
   0x3   :  { %2357 = sst [smem:[#allocation25_spill]] %s2337_s8 }
   0x4   :  { %2358 = sst [smem:[#allocation26_spill]] %s2338_s9 }
   0x5   :  { %2359 = sst [smem:[#allocation27_spill]] %s2339_s10 }
   0x6   :  { %2360 = sst [smem:[#allocation28_spill]] %s2341_s12 }
   0x7   :  { %2361 = sst [smem:[#allocation29_spill]] %s2342_s13 }
   0x8   :  { %18 = vsyncpa [#allocation3], 0 }
   0x9   :  { %20 = vsyncpa [#allocation3 + $0x1], 0 }
   0xa   :  { %21 = vsyncpa [#allocation6], 0 }
   0xb   :  { %22 = vsyncpa [#allocation9], 0 }
   0xc   :  { %23 = vsyncpa [#allocation12], 0 }
   0xd   :  { %24 = vsyncpa [#allocation15], 0 }
   0xe   :  { %25 = vsyncpa [#allocation4], 0 }
   0xf   :  { %27 = vsyncpa [#allocation4 + $0x1], 0  ;;  %s1866_s25 = smov 0   ;;  %s1868_s26 = smov 0  }
  0x10   :  { %s1870_s27 = smov 0   ;;  %s1872_s28 = smov 0  }
  0x11 LB: > { %s1778_s29 = smov [#allocation5]   ;;  %s1887_s14 = sadd.s32 4294967295, %s1776_s28   ;;  %s1776_s28 = sphi %s1872_s28, %s2394_s28   ;;  %s1772_s27 = sphi %s1870_s27, %s2393_s27   ;;  %s1768_s26 = sphi %s1868_s26, %s2392_s26   ;;  %s1764_s25 = sphi %s1866_s25, %s2391_s25  }
  0x12   : > { %s354_s30 = sshll.u32 %s1778_s29, 4  ;;  %p1185_p0 = scmp.ge.s32.totalorder %s1776_s28, 1  ;;  %s1892_s30 = int_to_ptr.vmem [resolvable:$true] %s354_s30 }
  0x13   : > { %p2350_p1 = scmp.eq.s32.totalorder %s1887_s14, 0  ;;  %p342_p2 = scmp.lt.s32.totalorder %s1776_s28, 5 }
  0x14   : > { %s1779_s16 = smov [#allocation8]   ;;  %s1780_s19 = smov [#allocation11]  }
  0x15   : > { %p1894_p3 = pnand %p1185_p0, %p342_p2  ;;  %s380_s17 = sshll.u32 %s1779_s16, 4  ;;  %s1906_s17 = int_to_ptr.vmem [resolvable:$true] %s380_s17 }
  0x16   : > { %s406_s20 = sshll.u32 %s1780_s19, 4  ;;  %s2364_s1 = sld [smem:[#allocation23_spill]]  ;;  %s1908_s20 = int_to_ptr.vmem [resolvable:$true] %s406_s20 }
  0x17   : > { %s2362_s15 = scalar_select %p1894_p3, 1, 0 }
  0x18   : > { %p1342_p4 = pneg %p1894_p3 }
  0x1a   : > { %p1902_p5 = pnand %p1342_p4, %p2350_p1 }
  0x1c   : > { %s1468_s23 = scalar_lea.hbm %s2364_s1, 256  ;;  %p1918_p7 = pneg %p1902_p5 }
  0x1d   : > { %p1469_p6 = scmp.ne.s32.totalorder %s2364_s1, %s1468_s23  ;;  %p1475_p10 = scmp.lt.u32.totalorder %s1468_s23, %s2364_s1 }
  0x1f   : > { %p1471_p8 = pnand %p1918_p7, %p1469_p6 }
  0x21   : > { %p1472_p9 = pneg %p1471_p8 }
  0x23   : > { %p1477_p11 = pnand %p1475_p10, %p1472_p9 }
  0x25   : > { %1480 = shalt.err (!%p1477_p11)
}
  0x26   : > { %s1481_s21 = scalar_lea.vmem %s1892_s30, 256  ;;  %p1489_p2 = scmp.lt.s32.totalorder %s1892_s30, %s1892_s30 }
  0x27   : > { %p1482_p12 = scmp.ne.s32.totalorder %s1892_s30, %s1481_s21  ;;  %p1490_p4 = scmp.lt.s32.totalorder %s1481_s21, %s1481_s21 }
  0x29   : > { %p1484_p13 = pnand %p1482_p12, %p1918_p7  ;;  %p1491_p6 = por %p1490_p4, %p1489_p2 }
  0x2b   : > { %p1485_p0 = pneg %p1484_p13 }
  0x2d   : > { %p1492_p8 = pnand %p1491_p6, %p1485_p0 }
  0x2f   : > { %1495 = shalt.err (!%p1492_p8)
}
  0x30   : > { %s2346_s22 = smov 128   ;;  %s2348_s13 = smov 8  }
  0x31   : > { %1345 = dma.hbm_to_vmem [thread:$0]  (!%p1902_p5), %s2364_s1, 256, %s1892_s30, [#allocation6], %s2346_s22, %s2346_s22, %s2348_s13  }
  0x32   : > { %s2366_s3 = sld [smem:[#allocation24_spill]] }
  0x38   : > { %s1496_s21 = scalar_lea.hbm %s2366_s3, 256 }
  0x39   : > { %p1497_p9 = scmp.ne.s32.totalorder %s2366_s3, %s1496_s21  ;;  %p1503_p12 = scmp.lt.u32.totalorder %s1496_s21, %s2366_s3 }
  0x3b   : > { %p1499_p10 = pnand %p1497_p9, %p1918_p7 }
  0x3d   : > { %p1500_p11 = pneg %p1499_p10 }
  0x3f   : > { %p1505_p13 = pnand %p1503_p12, %p1500_p11 }
  0x41   : > { %1508 = shalt.err (!%p1505_p13)
}
  0x42   : > { %s1509_s30 = scalar_lea.vmem %s1906_s17, 256  ;;  %p1517_p6 = scmp.lt.s32.totalorder %s1906_s17, %s1906_s17 }
  0x43   : > { %p1510_p0 = scmp.ne.s32.totalorder %s1906_s17, %s1509_s30  ;;  %p1518_p8 = scmp.lt.s32.totalorder %s1509_s30, %s1509_s30 }
  0x45   : > { %p1512_p2 = pnand %p1510_p0, %p1918_p7  ;;  %p1519_p9 = por %p1518_p8, %p1517_p6 }
  0x47   : > { %p1513_p4 = pneg %p1512_p2 }
  0x49   : > { %p1520_p10 = pnand %p1519_p9, %p1513_p4 }
  0x4b   : > { %1523 = shalt.err (!%p1520_p10)
}
  0x4c   : > { %1351 = dma.hbm_to_vmem [thread:$0]  (!%p1902_p5), %s2366_s3, 256, %s1906_s17, [#allocation9], %s2346_s22, %s2346_s22, %s2348_s13  }
  0x4d   : > { %s1524_s23 = scalar_lea.hbm %s2334_s5, 128 }
  0x4e   : > { %p1525_p11 = scmp.ne.s32.totalorder %s2334_s5, %s1524_s23  ;;  %p1531_p0 = scmp.lt.u32.totalorder %s1524_s23, %s2334_s5 }
  0x50   : > { %p1527_p12 = pnand %p1525_p11, %p1918_p7 }
  0x52   : > { %p1528_p13 = pneg %p1527_p12 }
  0x54   : > { %p1533_p2 = pnand %p1531_p0, %p1528_p13 }
  0x56   : > { %1536 = shalt.err (!%p1533_p2)
}
  0x57   : > { %s1537_s17 = scalar_lea.vmem %s1908_s20, 128  ;;  %p1545_p9 = scmp.lt.s32.totalorder %s1908_s20, %s1908_s20 }
  0x58   : > { %p1538_p4 = scmp.ne.s32.totalorder %s1908_s20, %s1537_s17  ;;  %p1546_p10 = scmp.lt.s32.totalorder %s1537_s17, %s1537_s17 }
  0x5a   : > { %p1540_p6 = pnand %p1538_p4, %p1918_p7  ;;  %p1547_p11 = por %p1546_p10, %p1545_p9 }
  0x5c   : > { %p1541_p8 = pneg %p1540_p6 }
  0x5e   : > { %p1548_p12 = pnand %p1547_p11, %p1541_p8 }
  0x60   : > { %1551 = shalt.err (!%p1548_p12)
}
  0x61   : > { %s2352_s30 = smov 64   ;;  %s1784_s8 = smov 4  }
  0x62   : > { %1357 = dma.hbm_to_vmem [thread:$0]  (!%p1902_p5), %s2334_s5, 128, %s1908_s20, [#allocation12], %s2352_s30, %s2352_s30, %s1784_s8  }
  0x63   : > { %s1785_s12 = smov [#allocation7]   ;;  %s1786_s24 = smov [#allocation10]  }
  0x64   : > { %s367_s23 = sshll.u32 %s1785_s12, 4  ;;  %s393_s29 = sshll.u32 %s1786_s24, 4  ;;  %s368_s23 = int_to_ptr.vmem [resolvable:$true] %s367_s23  ;;  %s394_s29 = int_to_ptr.vmem [resolvable:$true] %s393_s29 }
  0x65   : > { %s1552_s17 = scalar_lea.hbm %s2331_s2, 256 }
  0x66   : > { %p1553_p13 = scmp.ne.s32.totalorder %s2331_s2, %s1552_s17  ;;  %p1559_p4 = scmp.lt.u32.totalorder %s1552_s17, %s2331_s2 }
  0x68   : > { %p1555_p0 = pnand %p1553_p13, %p1918_p7 }
  0x6a   : > { %p1556_p2 = pneg %p1555_p0 }
  0x6c   : > { %p1561_p6 = pnand %p1559_p4, %p1556_p2 }
  0x6e   : > { %1564 = shalt.err (!%p1561_p6)
}
  0x6f   : > { %s1565_s20 = scalar_lea.vmem %s368_s23, 256  ;;  %p1573_p11 = scmp.lt.s32.totalorder %s368_s23, %s368_s23 }
  0x70   : > { %p1566_p8 = scmp.ne.s32.totalorder %s368_s23, %s1565_s20  ;;  %p1574_p12 = scmp.lt.s32.totalorder %s1565_s20, %s1565_s20 }
  0x72   : > { %p1568_p9 = pnand %p1566_p8, %p1918_p7  ;;  %p1575_p1 = por %p1574_p12, %p1573_p11 }
  0x74   : > { %p1569_p10 = pneg %p1568_p9 }
  0x76   : > { %p1576_p3 = pnand %p1575_p1, %p1569_p10 }
  0x78   : > { %1579 = shalt.err (!%p1576_p3)
}
  0x79   : > { %s2367_s22 = smov 8   ;;  %s2368_s13 = smov 128  }
  0x7a   : > { %1348 = dma.hbm_to_vmem [thread:$0]  (!%p1902_p5), %s2331_s2, 256, %s368_s23, [#allocation6], %s2368_s13, %s2368_s13, %s2367_s22  }
  0x7b   : > { %s1580_s12 = scalar_lea.hbm %s2333_s4, 256 }
  0x7c   : > { %p1581_p1 = scmp.ne.s32.totalorder %s2333_s4, %s1580_s12  ;;  %p1587_p0 = scmp.lt.u32.totalorder %s1580_s12, %s2333_s4 }
  0x7e   : > { %p1583_p3 = pnand %p1581_p1, %p1918_p7 }
  0x80   : > { %p1584_p13 = pneg %p1583_p3 }
  0x82   : > { %p1589_p2 = pnand %p1587_p0, %p1584_p13 }
  0x84   : > { %1592 = shalt.err (!%p1589_p2)
}
  0x85   : > { %s1593_s20 = scalar_lea.vmem %s394_s29, 256  ;;  %p1601_p9 = scmp.lt.s32.totalorder %s394_s29, %s394_s29 }
  0x86   : > { %p1594_p4 = scmp.ne.s32.totalorder %s394_s29, %s1593_s20  ;;  %p1602_p10 = scmp.lt.s32.totalorder %s1593_s20, %s1593_s20 }
  0x88   : > { %p1596_p6 = pnand %p1594_p4, %p1918_p7  ;;  %p1603_p11 = por %p1602_p10, %p1601_p9 }
  0x8a   : > { %p1597_p8 = pneg %p1596_p6 }
  0x8c   : > { %p1604_p12 = pnand %p1603_p11, %p1597_p8 }
  0x8e   : > { %1607 = shalt.err (!%p1604_p12)
}
  0x8f   : > { %1354 = dma.hbm_to_vmem [thread:$0]  (!%p1902_p5), %s2333_s4, 256, %s394_s29, [#allocation9], %s2368_s13, %s2368_s13, %s2367_s22  }
  0x90   : > { %s1787_s3 = smov [#allocation13]   ;;  %s1788_s10 = smov [#allocation14]  }
  0x91   : > { %s422_s9 = sshll.u32 %s1787_s3, 4  ;;  %s444_s12 = sshll.u32 %s1788_s10, 4  ;;  %s423_s9 = int_to_ptr.vmem [resolvable:$true] %s422_s9  ;;  %s445_s12 = int_to_ptr.vmem [resolvable:$true] %s444_s12 }
  0x92   : > { %s1608_s21 = scalar_lea.hbm %s2336_s7, 128 }
  0x93   : > { %p1609_p1 = scmp.ne.s32.totalorder %s2336_s7, %s1608_s21  ;;  %p1615_p0 = scmp.lt.u32.totalorder %s1608_s21, %s2336_s7 }
  0x95   : > { %p1611_p3 = pnand %p1609_p1, %p1918_p7 }
  0x97   : > { %p1612_p13 = pneg %p1611_p3 }
  0x99   : > { %p1617_p2 = pnand %p1615_p0, %p1612_p13 }
  0x9b   : > { %1620 = shalt.err (!%p1617_p2)
}
  0x9c   : > { %s1621_s29 = scalar_lea.vmem %s423_s9, 128  ;;  %p1629_p9 = scmp.lt.s32.totalorder %s423_s9, %s423_s9 }
  0x9d   : > { %p1622_p4 = scmp.ne.s32.totalorder %s423_s9, %s1621_s29  ;;  %p1630_p10 = scmp.lt.s32.totalorder %s1621_s29, %s1621_s29 }
  0x9f   : > { %p1624_p6 = pnand %p1622_p4, %p1918_p7  ;;  %p1631_p11 = por %p1630_p10, %p1629_p9 }
  0xa1   : > { %p1625_p8 = pneg %p1624_p6 }
  0xa3   : > { %p1632_p12 = pnand %p1631_p11, %p1625_p8 }
  0xa5   : > { %1635 = shalt.err (!%p1632_p12)
}
  0xa6   : > { %s2369_s1 = smov 64   ;;  %s1636_s19 = scalar_lea.hbm %s2340_s11, 1024 }
  0xa7   : > { %1360 = dma.hbm_to_vmem [thread:$0]  (!%p1902_p5), %s2336_s7, 128, %s423_s9, [#allocation12], %s2369_s1, %s2369_s1, %s1784_s8  }
  0xa8   : > { %p1637_p1 = scmp.ne.s32.totalorder %s2340_s11, %s1636_s19  ;;  %p1643_p0 = scmp.lt.u32.totalorder %s1636_s19, %s2340_s11 }
  0xaa   : > { %p1639_p3 = pnand %p1637_p1, %p1918_p7 }
  0xac   : > { %p1640_p13 = pneg %p1639_p3 }
  0xae   : > { %p1645_p2 = pnand %p1643_p0, %p1640_p13 }
  0xb0   : > { %1648 = shalt.err (!%p1645_p2)
}
  0xb1   : > { %s1649_s29 = scalar_lea.vmem %s445_s12, 1024  ;;  %p1657_p9 = scmp.lt.s32.totalorder %s445_s12, %s445_s12 }
  0xb2   : > { %p1650_p4 = scmp.ne.s32.totalorder %s445_s12, %s1649_s29  ;;  %p1658_p10 = scmp.lt.s32.totalorder %s1649_s29, %s1649_s29 }
  0xb4   : > { %p1652_p6 = pnand %p1650_p4, %p1918_p7  ;;  %p1659_p11 = por %p1658_p10, %p1657_p9 }
  0xb6   : > { %p1653_p8 = pneg %p1652_p6 }
  0xb8   : > { %p1660_p12 = pnand %p1659_p11, %p1653_p8 }
  0xba   : > { %1663 = shalt.err (!%p1660_p12)
}
  0xbb   : > { %1363 = dma.hbm_to_vmem [thread:$0]  (!%p1902_p5), %s2340_s11, 1024, %s445_s12, [#allocation15], %s2369_s1, %s2369_s1, %s1784_s8  }
  0xbc   : > { %s1184_s18 = sadd.s32 4294967294, %s1776_s28   ;;  %s2080_s16 = sadd.s32 1, %s1776_s28  }
  0xbd   : > { %s40_s3 = sadd.s32 1, %s1772_s27  ;;  %s37_s10 = ssub.s32 %s1776_s28, %s2080_s16 }
  0xbe   : > { %p47_p7 = scmp.ne.s32.totalorder %s1772_s27, %s1768_s26  ;;  %p38_p1 = scmp.eq.s32.totalorder %s37_s10, 0 }
  0xbf   : > { %p48_p3 = scmp.eq.s32.totalorder %s1776_s28, 0  ;;  %p53_p13 = scmp.ne.s32.totalorder %s1768_s26, %s1764_s25 }
  0xc0   : > { %p329_p0 = scmp.eq.s32.totalorder %s1887_s14, 3  ;;  %p2370_p4 = scmp.eq.s32.totalorder %s1887_s14, 0 }
  0xc1   : > { %s2092_s24 = scalar_select %p38_p1, %s1772_s27, %s40_s3  }
  0xc2   : > { %p49_p2 = por %p48_p3, %p47_p7  ;;  %p2096_p6 = por %p2370_p4, %p53_p13 }
  0xc3   : > { %p2100_p5 = por %p329_p0, %p47_p7  ;;  %p335_p8 = scmp.eq.s32.totalorder %s1184_s18, 3 }
  0xc4   : > { %p1379_p9 = scmp.lt.s32.totalorder %s1776_s28, 4  ;;  %s461_s12 = sand.u32 1, %s1772_s27  }
  0xc5   : > { %s2372_s8 = scalar_select %p2100_p5, 1, 0 }
  0xc6   : > { %p2106_p10 = por %p335_p8, %p53_p13  ;;  %s1194_s21 = sshll.u32 %s461_s12, 4 }
  0xc7   : > { %s1234_s17 = sshll.u32 %s1776_s28, 8  ;;  %s465_s9 = scalar_lea.vmem [#allocation2], %s1194_s21 }
  0xc8   : > { %s2373_s1 = scalar_select %p2106_p10, 1, 0 }
  0xc9   : > { %s2114_s29 = scalar_lea.hbm %s2329_s0, %s1234_s17  ;;  %s472_s30 = sshll.u32 %s465_s9, 4  ;;  %s2120_s30 = int_to_ptr.vmem [resolvable:$true] %s472_s30 }
  0xca   : > { %p2116_p11 = pnand %p1379_p9, %p49_p2  ;;  %s2122_s3 = scalar_lea.sflag [#allocation3], %s461_s12 }
  0xcb   : > { %s1664_s10 = scalar_lea.hbm %s2114_s29, 256  ;;  %s1669_s20 = scalar_lea.hbm %s2329_s0, 1024 }
  0xcc   : > { %p1665_p12 = scmp.ne.s32.totalorder %s2114_s29, %s1664_s10  ;;  %p1666_p7 = pneg %p2116_p11 }
  0xcd   : > { %p1670_p13 = scmp.lt.u32.totalorder %s2114_s29, %s2329_s0  ;;  %p1671_p0 = scmp.lt.u32.totalorder %s1669_s20, %s1664_s10 }
  0xce   : > { %p1667_p1 = pnand %p1666_p7, %p1665_p12  ;;  %p1673_p4 = scmp.lt.u32.totalorder %s1664_s10, %s2114_s29 }
  0xcf   : > { %p1672_p2 = por %p1671_p0, %p1670_p13 }
  0xd0   : > { %p1668_p3 = pneg %p1667_p1 }
  0xd1   : > { %p1674_p8 = por %p1673_p4, %p1672_p2 }
  0xd3   : > { %p1675_p9 = pnand %p1674_p8, %p1668_p3 }
  0xd5   : > { %1678 = shalt.err (!%p1675_p9)
}
  0xd6   : > { %s1679_s12 = scalar_lea.vmem %s2120_s30, 256  ;;  %s1789_s21 = smov [#allocation2]  }
  0xd7   : > { %p1680_p12 = scmp.ne.s32.totalorder %s2120_s30, %s1679_s12  ;;  %s1684_s17 = sshll.u32 %s1789_s21, 4  ;;  %s1685_s17 = int_to_ptr.vmem [resolvable:$false] %s1684_s17 }
  0xd8   : > { %s1686_s23 = scalar_lea.vmem %s1685_s17, 512  ;;  %p1687_p5 = scmp.lt.s32.totalorder %s2120_s30, %s1685_s17 }
  0xd9   : > { %p1682_p1 = pnand %p1680_p12, %p1666_p7  ;;  %p1688_p13 = scmp.lt.s32.totalorder %s1686_s23, %s1679_s12 }
  0xdb   : > { %p1683_p10 = pneg %p1682_p1  ;;  %p1689_p0 = por %p1688_p13, %p1687_p5 }
  0xdd   : > { %p1690_p2 = pnand %p1689_p0, %p1683_p10 }
  0xdf   : > { %1693 = shalt.err (!%p1690_p2)
}
  0xe0   : > { %1367 = dma.hbm_to_vmem [thread:$0]  (!%p2116_p11), %s2114_s29, 256, %s2120_s30, %s2122_s3, %s2368_s13, %s2368_s13, %s2367_s22  }
  0xe1   : > { %p2375_p7 = scmp.ne.s32.totalorder %s2362_s15, 0 }
  0xe2   : > { %s2156_s10 = sand.u32 (!%p2375_p7), 1, %s1768_s26  }
  0xe3   : > { %484 = sbr.rel (%p2375_p7) target bundleno = 1551 (0x60f), region = 72  ;;  %s1198_s20 = sshll.u32 (!%p2375_p7), %s2156_s10, 4 }
  0xe4   : > { %s487_s9 = scalar_lea.sflag (!%p2375_p7), [#allocation3], %s2156_s10  ;;  %s490_s18 = scalar_lea.vmem (!%p2375_p7), [#allocation2], %s1198_s20 }
  0xea   : > { %1739 = dma.done.wait (%p2096_p6), %s487_s9, 256  }
  0xeb   : > { %1741 = vsyncadd (%p2096_p6), %s487_s9, 4294967040  ;;  %p2376_p5 = scmp.eq.s32.totalorder %s1887_s14, 0 }
  0xed   : > { %1743 = dma.done.wait (%p2376_p5), [#allocation6], 512   ;;  %p2377_p10 = pmov %p2376_p5 }
  0xee   : > { %p2378_p11 = pmov %p2376_p5 }
  0xef   : > { %1745 = vsyncadd (%p2377_p10), [#allocation6], 4294966784 }
  0xf0   : > { %1747 = dma.done.wait (%p2378_p11), [#allocation9], 512   ;;  %p2379_p3 = pmov %p2376_p5 }
  0xf2   : > { %1749 = vsyncadd (%p2379_p3), [#allocation9], 4294966784  ;;  %p2380_p4 = pmov %p2379_p3 }
  0xf3   : > { %p2381_p8 = pmov %p2379_p3 }
  0xf4   : > { %1751 = dma.done.wait (%p2380_p4), [#allocation12], 256  }
  0xf5   : > { %1753 = vsyncadd (%p2381_p8), [#allocation12], 4294967040  ;;  %p2382_p6 = pmov %p2379_p3 }
  0xf6   : > { %p2383_p9 = pmov %p2379_p3 }
  0xf7   : > { %1755 = dma.done.wait (%p2382_p6), [#allocation15], 1024  }
  0xf8   : > { %1757 = vsyncadd (%p2383_p9), [#allocation15], 4294966272  ;;  %v2182_v0 = vld [vmem:[%s490_s18] sm:$0xff]  ;;  %v2184_v1 = vld [vmem:[%s490_s18 + $0x8] sm:$0xff]  ;;  %v1790_v6 = vmov 0.0   ;;  %vm1791_vm0 = vmmov 0  }
  0xf9   : > { %v564_v2 = vadd.f32 %v2184_v1, %v2182_v0  ;;  %v573_v3 = vmul.f32 %v2182_v0, %v2182_v0  ;;  %v574_v4 = vmul.f32 %v2184_v1, %v2184_v1  ;;  %1258 = vmatprep.subr.bf16.mxu0 %v1790_v6  ;;  %1264 = vmatprep.subr.bf16.mxu1 %v1790_v6  ;;  %v606_v7 = vld [vmem:[%s2335_s6] sm:$0xff]  ;;  %v1792_v8 = vmov 0   ;;  %v607_v9 = vld [vmem:[%s2335_s6 + $0x8] sm:$0xff]  ;;  %s2384_s3 = sld [smem:[#allocation25_spill]]  ;;  %v599_v38 = vld [vmem:[#allocation7] sm:$0xff]  ;;  %s2385_s9 = sld [smem:[#allocation26_spill]] }
  0xfa   : > { %1260 = vmatprep.mubr.msk.bf16.mxu0 %vm1791_vm0, %v1790_v6  ;;  %1266 = vmatprep.mubr.msk.bf16.mxu1 %vm1791_vm0, %v1790_v6  ;;  %v595_v34 = vld [vmem:[#allocation5] sm:$0xff]  ;;  %v596_v35 = vld [vmem:[#allocation5 + $0x8] sm:$0xff]  ;;  %v600_v39 = vld [vmem:[#allocation7 + $0x8] sm:$0xff]  ;;  %vm623_vm1 = vcmask 130048   ;;  %s2386_s29 = sld [smem:[#allocation27_spill]]  ;;  %s2387_s21 = sld [smem:[#allocation28_spill]] }
  0xfb   : > { %565 = vadd.xlane.f32.xlu0 %v564_v2  ;;  %v575_v5 = vadd.f32 %v574_v4, %v573_v3  ;;  %1436 = vset.pattern.permute.xlu1 %v1792_v8  ;;  %v1438_v45 = vld [vmem:[#allocation11] sm:$0xff]   ;;  %v1439_v4 = vld [vmem:[#allocation13] sm:$0xff]   ;;  %s560_s17 = scalar_lea.vmem [#allocation16], %s1198_s20  ;;  %s1235_s18 = sshll.u32 %s1887_s14, 8 }
  0xfc   : > { %1437 = vset.pattern.permute.xlu0 %v1792_v8  ;;  %610 = vperm.xlu1 %1436, %v606_v7   ;;  %s1044_s23 = sshll.u32 %s560_s17, 4  ;;  %s2388_s13 = sld [smem:[#allocation29_spill]]  ;;  %s2281_s23 = int_to_ptr.vmem [resolvable:$true] %s1044_s23 }
  0xfd   : > { %s1031_s20 = scalar_lea.sflag [#allocation4], %s2156_s10  ;;  %p2389_p1 = scmp.ne.s32.totalorder %s2372_s8, 0 }
  0xfe   : > { %s1793_s14 = smov [#allocation16]  }
  0xff   : > { %576 = vadd.xlane.f32.xlu0 %v575_v5  ;;  %v682_v10 = vld [vmem:[%s2384_s3 + $0x8] sm:$0xff]  ;;  %v681_v46 = vld [vmem:[%s2384_s3] sm:$0xff]  ;;  %v744_v5 = vlaneseq  ;;  %s1698_s30 = sshll.u32 %s1793_s14, 4  ;;  %s1699_s30 = int_to_ptr.vmem [resolvable:$false] %s1698_s30 }
 0x100   : > { %615 = vperm.xlu1 %1436, %v607_v9   ;;  %s1700_s12 = scalar_lea.vmem %s1699_s30, 512  ;;  %p1701_p2 = scmp.lt.s32.totalorder %s2281_s23, %s1699_s30 }
 0x101   : > { %v745_v9 = vand.u32 127, %v744_v5  ;;  %v1451_v5 = vld [vmem:[#allocation14 + $0x18] sm:$0xff]  }
 0x102   : > { %s2286_s19 = scalar_lea.hbm %s2388_s13, %s1235_s18 }
 0x103   : > { %vm746_vm2 = vcmp.lt.s32.totalorder %v745_v9, 8  ;;  %v1454_v9 = vld [vmem:[#allocation14 + $0x30] sm:$0xff]  }
 0x104   : > { %690 = vperm.xlu1 %1436, %v682_v10  }
 0x115   : > { %685 = vperm.xlu0 %1437, %v681_v46  }
 0x17b   : > { %v611_v47 = vpop.permute.xlu1 %610 }
 0x17f   : > { %v616_v51 = vpop.permute.xlu1 %615 }
 0x188   : > { %v566_v11 = vpop.xlane.xlu0 %565 }
 0x189   : > { %v567_v12 = vrot.slane %v566_v11, 4 }
 0x18b   : > { %v568_v13 = vadd.f32 %v567_v12, %v566_v11  ;;  %v691_v12 = vpop.permute.xlu1 %690 }
 0x18c   : > { %v577_v14 = vpop.xlane.xlu0 %576 }
 0x18d   : > { %v569_v15 = vrot.slane %v568_v13, 2  ;;  %v578_v16 = vrot.slane %v577_v14, 4 }
 0x18f   : > { %v570_v17 = vadd.f32 %v569_v15, %v568_v13  ;;  %v579_v18 = vadd.f32 %v578_v16, %v577_v14 }
 0x191   : > { %v571_v19 = vrot.slane %v570_v17, 1  ;;  %v580_v20 = vrot.slane %v579_v18, 2 }
 0x193   : > { %v572_v21 = vadd.f32 %v571_v19, %v570_v17  ;;  %v581_v22 = vadd.f32 %v580_v20, %v579_v18 }
 0x194   : > { %v686_v7 = vpop.permute.xlu0 %685 }
 0x195   : > { %v584_v23 = vmul.f32 0.0078125, %v572_v21  ;;  %v582_v24 = vrot.slane %v581_v22, 1 }
 0x197   : > { %v583_v25 = vadd.f32 %v582_v24, %v581_v22  ;;  %v586_v26 = vmul.f32 %v584_v23, %v584_v23  ;;  %v589_v31 = vsub.f32 %v2182_v0, %v584_v23  ;;  %v590_v32 = vsub.f32 %v2184_v1, %v584_v23  ;;  %v1441_v23 = vld [vmem:[%s2385_s9 + $0x8] sm:$0xff]   ;;  %v1442_v24 = vld [vmem:[%s2385_s9 + $0x10] sm:$0xff]  }
 0x199   : > { %v585_v27 = vmul.f32 0.0078125, %v583_v25  ;;  %v1443_v25 = vld [vmem:[%s2385_s9 + $0x18] sm:$0xff]  }
 0x19b   : > { %v587_v28 = vsub.f32 %v585_v27, %v586_v26  ;;  %v1444_v26 = vld [vmem:[%s2385_s9 + $0x20] sm:$0xff]   ;;  %v1445_v27 = vld [vmem:[%s2385_s9 + $0x28] sm:$0xff]  }
 0x19d   : > { %v588_v29 = vmax.f32 %v587_v28, 0.0  ;;  %v1446_v28 = vld [vmem:[%s2385_s9 + $0x30] sm:$0xff]  }
 0x19f   : > { %v591_v30 = vadd.f32 1e-05, %v588_v29  ;;  %v1447_v29 = vld [vmem:[%s2385_s9 + $0x38] sm:$0xff]  }
 0x1a1   : > { %1456 = vrsqrt.f32 %v591_v30  ;;  %v1448_v30 = vld [vmem:[#allocation14] sm:$0xff]  }
 0x1ab   : > { %v1457_v33 = vpop.eup %1456 }
 0x1ac   : > { %v593_v36 = vmul.f32 %v1457_v33, %v589_v31  ;;  %v594_v37 = vmul.f32 %v1457_v33, %v590_v32  ;;  %v1449_v31 = vld [vmem:[#allocation14 + $0x8] sm:$0xff]  }
 0x1ae   : > { %v597_v40 = vmul.f32 %v595_v34, %v593_v36  ;;  %v598_v41 = vmul.f32 %v596_v35, %v594_v37 }
 0x1b0   : > { %v601_v42 = vadd.f32 %v599_v38, %v597_v40  ;;  %v602_v43 = vadd.f32 %v600_v39, %v598_v41 }
 0x1b2   : > { %v603_v44 = vpack.c.bf16 %v602_v43, %v601_v42 }
 0x1b4   : > { %1259 = vmatpush3.bf16.msra.mxu0 %v603_v44 }
 0x1b5   : > { %1270 = vmatprep.subr.bf16.mxu0 %v1790_v6 }
 0x1b7   : > { %1261 = vmatmul.mubr.msk.bf16.vlgmr.msra.gmra.mrb[0].mxu0 %vm623_vm1, %v1438_v45 }
 0x1b8   : > { %1286 = vmatprep.mubr.msk.bf16.mxu0 %vm1791_vm0, %v1790_v6 }
 0x28a   : > { %v661_v48 = vpop.f32.mrb[0].mxu0 }
 0x28b   : > { %v662_v49 = vadd.f32 %v661_v48, %v611_v47  ;;  %v1262_v50 = vpop.f32.mrb[1].mxu0 }
 0x28c   : > { %v664_v52 = vpop.f32.mrb[2].mxu0 }
 0x28d   : > { %v670_v53 = vmul.f32 0.70710677, %v662_v49  ;;  %v665_v54 = vadd.f32 %v664_v52, %v616_v51  ;;  %v1263_v55 = vpop.f32.mrb[3].mxu0  ;;  %v668_v60 = vmul.f32 0.5, %v662_v49 }
 0x28e   : > { %v782_v55 = vld [vmem:[#allocation8] sm:$0xff] }
 0x28f   : > { %1458 = verf.f32 %v670_v53  ;;  %v671_v56 = vmul.f32 0.70710677, %v665_v54  ;;  %v669_v61 = vmul.f32 0.5, %v665_v54 }
 0x291   : > { %1460 = verf.f32 %v671_v56  ;;  %v783_v56 = vld [vmem:[#allocation8 + $0x8] sm:$0xff] }
 0x299   : > { %v1459_v57 = vpop.eup %1458 }
 0x29a   : > { %v674_v58 = vadd.f32 1.0, %v1459_v57 }
 0x29b   : > { %v1461_v59 = vpop.eup %1460 }
 0x29c   : > { %v675_v62 = vadd.f32 1.0, %v1461_v59  ;;  %v676_v63 = vmul.f32 %v674_v58, %v668_v60  ;;  %v786_v59 = vld [vmem:[#allocation10] sm:$0xff]  ;;  %v787_v60 = vld [vmem:[#allocation10 + $0x8] sm:$0xff] }
 0x29e   : > { %v677_v2 = vmul.f32 %v675_v62, %v669_v61 }
 0x2a0   : > { %v680_v3 = vpack.c.bf16 %v677_v2, %v676_v63 }
 0x2a2   : > { %1265 = vmatpush3.bf16.msra.mxu1 %v680_v3 }
 0x2a3   : > { %1290 = vmatprep.subr.bf16.mxu1 %v1790_v6 }
 0x2a5   : > { %1267 = vmatmul.mubr.msk.bf16.vlgmr.msra.gmra.mrb[0].mxu1 %vm623_vm1, %v1439_v4  ;;  %v1450_v4 = vld [vmem:[#allocation14 + $0x10] sm:$0xff]  }
 0x2a6   : > { %1306 = vmatprep.mubr.msk.bf16.mxu1 %vm1791_vm0, %v1790_v6  ;;  %1291 = vmatpush3.bf16.msra.mxu1 %v1448_v30 }
 0x2a7   : > { %1292 = vmatprep.subr.bf16.mxu1 %v1790_v6 }
 0x2aa   : > { %1293 = vmatpush3.bf16.msra.mxu1 %v1449_v31 }
 0x2ab   : > { %1294 = vmatprep.subr.bf16.mxu1 %v1790_v6 }
 0x2ae   : > { %1295 = vmatpush3.bf16.msra.mxu1 %v1450_v4 }
 0x2af   : > { %1296 = vmatprep.subr.bf16.mxu1 %v1790_v6 }
 0x2b2   : > { %1297 = vmatpush3.bf16.msra.mxu1 %v1451_v5 }
 0x2b3   : > { %1298 = vmatprep.subr.bf16.mxu1 %v1790_v6 }
 0x378   : > { %v735_v8 = vpop.f32.mrb[0].mxu1 }
 0x379   : > { %v736_v10 = vadd.f32 %v735_v8, %v686_v7  ;;  %v1268_v11 = vpop.f32.mrb[1].mxu1  ;;  %v1452_v7 = vld [vmem:[#allocation14 + $0x20] sm:$0xff]   ;;  %v1453_v8 = vld [vmem:[#allocation14 + $0x28] sm:$0xff]  }
 0x37a   : > { %v738_v13 = vpop.f32.mrb[2].mxu1  ;;  %1299 = vmatpush3.bf16.msra.mxu1 %v1452_v7  ;;  %v1211_v11 = vld [vmem:[%s2386_s29] ss:$0 sm:$0xff]  ;;  %s1694_s29 = scalar_lea.vmem %s2281_s23, 256 }
 0x37b   : > { %v742_v14 = vadd.f32 %v736_v10, %v2182_v0  ;;  %v739_v15 = vadd.f32 %v738_v13, %v691_v12  ;;  %v1269_v16 = vpop.f32.mrb[3].mxu1  ;;  %1300 = vmatprep.subr.bf16.mxu1 %v1790_v6  ;;  %v1455_v10 = vld [vmem:[#allocation14 + $0x38] sm:$0xff]   ;;  %p1695_p12 = scmp.ne.s32.totalorder %s2281_s23, %s1694_s29  ;;  %p1702_p7 = scmp.lt.s32.totalorder %s1700_s12, %s1694_s29 }
 0x37d   : > { %v743_v17 = vadd.f32 %v739_v15, %v2184_v1  ;;  %v2222_v18 = vsel %vm746_vm2, %v742_v14, 0.0  ;;  %v1440_v1 = vld [vmem:[%s2385_s9] sm:$0xff]   ;;  %p1696_p13 = pnand %p1695_p12, %p2389_p1  ;;  %p1703_p5 = por %p1702_p7, %p1701_p2 }
 0x37e   : > { %v760_v22 = vmul.f32 %v2222_v18, %v2222_v18  ;;  %1271 = vmatpush3.bf16.msra.mxu0 %v1440_v1  ;;  %1301 = vmatpush3.bf16.msra.mxu1 %v1453_v8 }
 0x37f   : > { %v2224_v19 = vsel %vm746_vm2, %v743_v17, 0.0  ;;  %1272 = vmatprep.subr.bf16.mxu0 %v1790_v6  ;;  %1302 = vmatprep.subr.bf16.mxu1 %v1790_v6  ;;  %p1697_p0 = pneg %p1696_p13 }
 0x380   : > { %v751_v20 = vadd.f32 %v2224_v19, %v2222_v18  ;;  %v761_v21 = vmul.f32 %v2224_v19, %v2224_v19 }
 0x381   : > { %p1704_p10 = pnand %p1703_p5, %p1697_p0 }
 0x382   : > { %752 = vadd.xlane.f32.xlu1 %v751_v20  ;;  %v762_v0 = vadd.f32 %v761_v21, %v760_v22  ;;  %1273 = vmatpush3.bf16.msra.mxu0 %v1441_v23 }
 0x383   : > { %1274 = vmatprep.subr.bf16.mxu0 %v1790_v6  ;;  %1303 = vmatpush3.bf16.msra.mxu1 %v1454_v9 }
 0x384   : > { %1304 = vmatprep.subr.bf16.mxu1 %v1790_v6 }
 0x386   : > { %763 = vadd.xlane.f32.xlu1 %v762_v0  ;;  %1275 = vmatpush3.bf16.msra.mxu0 %v1442_v24 }
 0x387   : > { %1276 = vmatprep.subr.bf16.mxu0 %v1790_v6  ;;  %1305 = vmatpush3.bf16.msra.mxu1 %v1455_v10 }
 0x38a   : > { %1277 = vmatpush3.bf16.msra.mxu0 %v1443_v25 }
 0x38b   : > { %1278 = vmatprep.subr.bf16.mxu0 %v1790_v6 }
 0x38e   : > { %1279 = vmatpush3.bf16.msra.mxu0 %v1444_v26  ;;  %v1220_v26 = vld [vmem:[%s2387_s21] ss:$0 sm:$0xff] }
 0x38f   : > { %1280 = vmatprep.subr.bf16.mxu0 %v1790_v6 }
 0x392   : > { %1281 = vmatpush3.bf16.msra.mxu0 %v1445_v27 }
 0x393   : > { %1282 = vmatprep.subr.bf16.mxu0 %v1790_v6 }
 0x396   : > { %1283 = vmatpush3.bf16.msra.mxu0 %v1446_v28 }
 0x397   : > { %1284 = vmatprep.subr.bf16.mxu0 %v1790_v6 }
 0x39a   : > { %1285 = vmatpush3.bf16.msra.mxu0 %v1447_v29 }
 0x40f   : > { %v753_v32 = vpop.xlane.xlu1 %752 }
 0x410   : > { %v754_v33 = vrot.slane %v753_v32, 4 }
 0x412   : > { %v755_v34 = vadd.f32 %v754_v33, %v753_v32 }
 0x413   : > { %v764_v35 = vpop.xlane.xlu1 %763 }
 0x414   : > { %v756_v36 = vrot.slane %v755_v34, 2  ;;  %v765_v37 = vrot.slane %v764_v35, 4 }
 0x416   : > { %v757_v38 = vadd.f32 %v756_v36, %v755_v34  ;;  %v766_v39 = vadd.f32 %v765_v37, %v764_v35 }
 0x418   : > { %v758_v40 = vrot.slane %v757_v38, 1  ;;  %v767_v41 = vrot.slane %v766_v39, 2 }
 0x41a   : > { %v759_v42 = vadd.f32 %v758_v40, %v757_v38  ;;  %v768_v43 = vadd.f32 %v767_v41, %v766_v39 }
 0x41c   : > { %v771_v44 = vmul.f32 0.0078125, %v759_v42  ;;  %v769_v45 = vrot.slane %v768_v43, 1 }
 0x41e   : > { %v770_v46 = vadd.f32 %v769_v45, %v768_v43  ;;  %v773_v47 = vmul.f32 %v771_v44, %v771_v44  ;;  %v776_v52 = vsub.f32 %v2222_v18, %v771_v44  ;;  %v777_v53 = vsub.f32 %v2224_v19, %v771_v44 }
 0x420   : > { %v772_v48 = vmul.f32 0.0078125, %v770_v46 }
 0x422   : > { %v774_v49 = vsub.f32 %v772_v48, %v773_v47 }
 0x424   : > { %v775_v50 = vmax.f32 %v774_v49, 0.0 }
 0x426   : > { %v778_v51 = vadd.f32 1e-05, %v775_v50 }
 0x428   : > { %1462 = vrsqrt.f32 %v778_v51 }
 0x432   : > { %v1463_v54 = vpop.eup %1462 }
 0x433   : > { %v780_v57 = vmul.f32 %v1463_v54, %v776_v52  ;;  %v781_v58 = vmul.f32 %v1463_v54, %v777_v53 }
 0x435   : > { %v784_v61 = vmul.f32 %v782_v55, %v780_v57  ;;  %v785_v62 = vmul.f32 %v783_v56, %v781_v58 }
 0x437   : > { %v788_v63 = vadd.f32 %v786_v59, %v784_v61  ;;  %v789_v2 = vadd.f32 %v787_v60, %v785_v62 }
 0x439   : > { %v790_v3 = vpack.c.bf16 %v789_v2, %v788_v63 }
 0x43b   : > { %1287 = vmatmul.mubr.bf16.vlgmr.msra.gmra.mrb[4].mxu0 %v790_v3 }
 0x50e   : > { %v896_v12 = vpop.f32.mrb[4].mxu0 }
 0x50f   : > { %v897_v13 = vadd.f32 %v1211_v11, %v896_v12  ;;  %v1288_v14 = vpop.f32.mrb[5].mxu0 }
 0x510   : > { %v899_v15 = vpop.f32.mrb[6].mxu0 }
 0x511   : > { %v905_v16 = vmul.f32 0.70710677, %v897_v13  ;;  %v900_v17 = vadd.f32 %v1211_v11, %v899_v15  ;;  %v1289_v18 = vpop.f32.mrb[7].mxu0  ;;  %v903_v22 = vmul.f32 0.5, %v897_v13 }
 0x513   : > { %1464 = verf.f32 %v905_v16  ;;  %v906_v19 = vmul.f32 0.70710677, %v900_v17  ;;  %v904_v0 = vmul.f32 0.5, %v900_v17 }
 0x515   : > { %1466 = verf.f32 %v906_v19 }
 0x51d   : > { %v1465_v20 = vpop.eup %1464 }
 0x51e   : > { %v909_v6 = vadd.f32 1.0, %v1465_v20 }
 0x51f   : > { %v1467_v21 = vpop.eup %1466 }
 0x520   : > { %v910_v1 = vadd.f32 1.0, %v1467_v21  ;;  %v911_v23 = vmul.f32 %v909_v6, %v903_v22 }
 0x522   : > { %v912_v24 = vmul.f32 %v910_v1, %v904_v0 }
 0x524   : > { %v913_v25 = vpack.c.bf16 %v912_v24, %v911_v23 }
 0x526   : > { %1307 = vmatmul.mubr.bf16.vlgmr.msra.gmra.mrb[4].mxu1 %v913_v25 }
 0x5f9   : > { %v1019_v27 = vpop.f32.mrb[4].mxu1 }
 0x5fa   : > { %v1020_v28 = vadd.f32 %v1220_v26, %v1019_v27  ;;  %v1308_v29 = vpop.f32.mrb[5].mxu1 }
 0x5fb   : > { %v1022_v30 = vpop.f32.mrb[6].mxu1 }
 0x5fc   : > { %v1026_v31 = vadd.f32 %v1020_v28, %v788_v63  ;;  %v1023_v32 = vadd.f32 %v1220_v26, %v1022_v30  ;;  %v1309_v33 = vpop.f32.mrb[7].mxu1 }
 0x5fe   : > { %1028 = vst [vmem:[%s560_s17] sm:$0xff] %v1026_v31  ;;  %v1027_v34 = vadd.f32 %v1023_v32, %v789_v2 }
 0x600   : > { %1029 = vst [vmem:[%s560_s17 + $0x8] sm:$0xff] %v1027_v34 }
 0x601   : > { %1707 = shalt.err (!%p1704_p10)
}
 0x602   : > { %s1708_s21 = scalar_lea.hbm %s2286_s19, 256  ;;  %s1712_s15 = scalar_lea.hbm %s2388_s13, 1024 }
 0x603   : > { %p1709_p11 = scmp.ne.s32.totalorder %s2286_s19, %s1708_s21  ;;  %p1713_p8 = scmp.lt.u32.totalorder %s2286_s19, %s2388_s13 }
 0x604   : > { %p1714_p6 = scmp.lt.u32.totalorder %s1712_s15, %s1708_s21  ;;  %p1716_p12 = scmp.lt.u32.totalorder %s1708_s21, %s2286_s19 }
 0x605   : > { %p1710_p3 = pnand %p1709_p11, %p2389_p1 }
 0x606   : > { %p1715_p9 = por %p1714_p6, %p1713_p8 }
 0x607   : > { %p1711_p4 = pneg %p1710_p3 }
 0x608   : > { %p1717_p13 = por %p1716_p12, %p1715_p9 }
 0x60a   : > { %p1718_p0 = pnand %p1717_p13, %p1711_p4 }
 0x60c   : > { %1721 = shalt.err (!%p1718_p0)
}
 0x60d   : > { %s1794_s29 = smov 128   ;;  %s1795_s30 = smov 8  }
 0x60e   : > { %1340 = dma.vmem_to_hbm [thread:$0]  (%p2389_p1), %s2281_s23, 256, %s2286_s19, %s1031_s20, %s1794_s29, %s1794_s29, %s1795_s30  }
 0x60f PF: > { %p1387_p2 = scmp.ge.s32.totalorder %s1776_s28, 2  ;;  %s1059_s12 = sand.u32 1, %s1764_s25  }
 0x610   : > { %p2390_p7 = scmp.ne.s32.totalorder %s2373_s1, 0  ;;  %s1060_s21 = scalar_lea.sflag [#allocation4], %s1059_s12 }
 0x612   : > { %p1369_p5 = pnand %p1387_p2, %p2390_p7 }
 0x614   : > { %1759 = dma.done.wait (!%p1369_p5), %s1060_s21, 256  }
 0x615   : > { %1761 = vsyncadd (!%p1369_p5), %s1060_s21, 4294967040  ;;  %p30_p10 = scmp.ge.s32.totalorder %s2080_s16, 6   ;;  %s2391_s25 = smov %s1768_s26 }
 0x616   : > { %s2392_s26 = smov %s1772_s27  ;;  %s2393_s27 = smov %s2092_s24 }
 0x617   : > { %s2394_s28 = smov %s2080_s16  ;;  %32 = sbr.rel (!%p30_p10) target bundleno = 17 (0x11), region = 145 }
 0x61e   :  { %1065 = vsyncpa [#allocation3], 1 }
 0x61f   :  { %1067 = vsyncpa [#allocation3 + $0x1], 1 }
 0x620   :  { %1068 = vsyncpa [#allocation6], 1 }
 0x621   :  { %1069 = vsyncpa [#allocation9], 1 }
 0x622   :  { %1070 = vsyncpa [#allocation12], 1 }
 0x623   :  { %1071 = vsyncpa [#allocation15], 1 }
 0x624   :  { %1072 = vsyncpa [#allocation4], 1 }
 0x625   :  { %1074 = vsyncpa [#allocation4 + $0x1], 1 }

</bundles_post_ra>
